<compile_context>
chip_gen: v5e
topology: v5e:2x2
jax: 0.10.0
libtpu: 0.0.40
codegen_flags: <defaults>
</compile_context>

<pallas_src>
import math

import jax
import jax.numpy as jnp
from jax.experimental import pallas as pl
from jax.experimental.pallas import tpu as pltpu


def _sse_kernel(xr_ref, wsel_ref, b_ref, t_ref, out_ref, acc_ref):
    """Accumulate squared errors into a VMEM scratch; collapse on last step."""
    step = pl.program_id(1)

    @pl.when(step == 0)
    def _():
        acc_ref[...] = jnp.zeros_like(acc_ref)

    # Surrogate model forward for G nodes per lane-dense row:
    #   (tile, G*F) @ (G*F, G) -> (tile, G), f32 accumulate on the MXU.
    y = jnp.dot(xr_ref[...], wsel_ref[...], preferred_element_type=jnp.float32)
    d = t_ref[...].astype(jnp.float32) - (y + b_ref[0, 0])
    acc_ref[...] += d * d                      # pure VPU, no per-step reduce

    @pl.when(step == pl.num_programs(1) - 1)
    def _():
        # One cross-lane reduce per core on the otherwise-idle XLU; write the
        # per-core SSE broadcast into a single (8,128) tile.
        sse = jnp.sum(acc_ref[...])
        out_ref[...] = jnp.full(out_ref.shape, sse, dtype=out_ref.dtype)


def make_selection_weights(w, group, dtype):
    """Block-diagonal kron(I_G, w): (G*F, G). Precompute once per weight set."""
    return jnp.kron(jnp.eye(group, dtype=dtype), w.astype(dtype))


def loss_wrapper_forward(x, targets, w, b, *, tile_rows=256, num_cores=1,
                         wsel=None):
    """Pallas equivalent of LossWrapper.forward (task_num=1, loss='mse').

    num_cores=1 is optimal on single-TC chips (v5e/v6e); pass num_cores=2 on
    v7x so the leading 'parallel' grid axis shards across its two TensorCores.
    """
    n, f = x.shape

    # Pack G nodes per row so the row width G*F is a multiple of 128 lanes and
    # the targets view (N,1) -> (N/G, G) stays reasonably lane-dense.
    base = 128 // math.gcd(f, 128)
    group = base * max(1, 32 // base)          # ~32 nodes per lane-dense row
    # TODO(synk): arbitrary N needs tail padding + masking of padded elements.
    assert n % group == 0, (n, group)
    r = n // group

    cores = num_cores if (r % num_cores == 0 and r // num_cores >= 8) else 1
    per_core = r // cores
    assert per_core % 8 == 0, per_core

    # Largest tile <= requested that divides per_core and is a multiple of 8.
    tile = min(tile_rows, per_core)
    while tile > 8 and (per_core % tile != 0 or tile % 8 != 0):
        tile -= 8
    assert per_core % tile == 0 and tile % 8 == 0, (per_core, tile)
    steps = per_core // tile

    # Lane-dense views (contiguous reshapes, NO dtype change => no extra HBM
    # copy of the streamed operands).
    xr = x.reshape(r, group * f)                                   # (R, G*F)
    tr = targets.reshape(r, group)                                 # (R, G)
    if wsel is None:
        wsel = make_selection_weights(w, group, x.dtype)           # (G*F, G)
    b2 = jnp.asarray(b, dtype=jnp.float32).reshape(1, 1)           # SMEM scalar

    out = pl.pallas_call(
        _sse_kernel,
        out_shape=jax.ShapeDtypeStruct((cores, 8, 128), jnp.float32),
        grid_spec=pltpu.PrefetchScalarGridSpec(
            num_scalar_prefetch=0,
            grid=(cores, steps),
            in_specs=[
                pl.BlockSpec((tile, group * f),
                             lambda c, i: (c * steps + i, 0)),      # X tile
                pl.BlockSpec((group * f, group),
                             lambda c, i: (0, 0)),                  # Wsel (resident)
                pl.BlockSpec((1, 1), lambda c, i: (0, 0),
                             memory_space=pltpu.MemorySpace.SMEM),  # bias scalar
                pl.BlockSpec((tile, group),
                             lambda c, i: (c * steps + i, 0)),      # targets tile
            ],
            out_specs=pl.BlockSpec((1, 8, 128), lambda c, i: (c, 0, 0)),
            scratch_shapes=[pltpu.VMEM((tile, group), jnp.float32)],
        ),
        compiler_params=pltpu.CompilerParams(
            # leading axis shards the node stream across v7x's 2 TensorCores;
            # trailing axis is the sequential node-tile reduction.
            dimension_semantics=("parallel", "arbitrary"),
        ),
    )(xr, wsel, b2, tr)

    # Only `cores` scalars left to combine; mean reduction of MSELoss.
    return jnp.sum(out[:, 0, 0]) / jnp.float32(n)


def _reference(x, targets, w, b):
    out = x.astype(jnp.float32) @ w.astype(jnp.float32) + jnp.float32(b).reshape(())
    d = targets.astype(jnp.float32).reshape(-1) - out.reshape(-1)
    return jnp.mean(d * d)


if __name__ == "__main__":
    key = jax.random.PRNGKey(0)
    k_x, k_t, k_w, k_b, k_c = jax.random.split(key, 5)

    N, F = 1024, 32                       # small: N nodes, F node features
    x = jax.random.normal(k_x, (N, F), dtype=jnp.float32)
    targets = jax.random.normal(k_t, (N, 1), dtype=jnp.float32)

    # deterministic synthetic model parameters (linear surrogate for `model`)
    w = jax.random.normal(k_w, (F, 1), dtype=jnp.float32) * 0.1
    b = jax.random.normal(k_b, (1, 1), dtype=jnp.float32) * 0.1

    # unused graph-side inputs of the original signature (kept for parity)
    coords = jax.random.normal(k_c, (N, 2), dtype=jnp.float32)
    edge_index = jnp.zeros((2, N), dtype=jnp.int32)
    edge_weight = jnp.ones((N,), dtype=jnp.float32)
    morans_input = None                   # only used for task_num > 1

    # Hoisted (per-weight-set) selection matrix, reused across calls.
    base = 128 // math.gcd(F, 128)
    group = base * max(1, 32 // base)
    wsel = make_selection_weights(w, group, x.dtype)

    loss = loss_wrapper_forward(x, targets, w, b, wsel=wsel)
    loss = jax.block_until_ready(loss)

    ref = _reference(x, targets, w, b)
    assert jnp.allclose(loss, ref, rtol=1e-4, atol=1e-5), (loss, ref)

    print("KERNEL_OK")
</pallas_src>

<mosaic_0001>
module attributes {stable_mosaic.version = 11 : i64} {
  func.func @_sse_kernel(%arg0: i32, %arg1: i32, %arg2: memref<32x1024xf32, #tpu.memory_space<vmem>>, %arg3: memref<1024x32xf32, #tpu.memory_space<vmem>>, %arg4: memref<1x1xf32, #tpu.memory_space<smem>>, %arg5: memref<32x32xf32, #tpu.memory_space<vmem>>, %arg6: memref<1x8x128xf32, #tpu.memory_space<vmem>>, %arg7: memref<32x32xf32, #tpu.memory_space<vmem>>) attributes {dimension_semantics = [#tpu.dimension_semantics<parallel>, #tpu.dimension_semantics<arbitrary>], iteration_bounds = array<i64: 1, 1>, scalar_prefetch = 0 : i64, scratch_operands = 1 : i64, tpu.core_type = #tpu.core_type<tc>, window_params = [{transform_indices = @transform_0, window_bounds = array<i64: 32, 1024>}, {pipeline_mode = #tpu.pipeline_mode<synchronous>, transform_indices = @transform_1, window_bounds = array<i64: 1024, 32>}, {transform_indices = @transform_2, window_bounds = array<i64: 1, 1>}, {transform_indices = @transform_3, window_bounds = array<i64: 32, 32>}, {transform_indices = @transform_4, window_bounds = array<i64: 1, 8, 128>}]} {
    %c0_i32 = arith.constant 0 : i32
    %0 = arith.cmpi eq, %arg1, %c0_i32 : i32
    %1 = arith.extui %0 : i1 to i32
    %c0_i32_0 = arith.constant 0 : i32
    %2 = arith.cmpi ne, %1, %c0_i32_0 : i32
    scf.if %2 {
      %cst_14 = arith.constant 0.000000e+00 : f32
      %18 = vector.broadcast %cst_14 : f32 to vector<32x32xf32>
      %c0_15 = arith.constant 0 : index
      %c0_16 = arith.constant 0 : index
      %19 = vector.load %arg7[%c0_15, %c0_16] : memref<32x32xf32, #tpu.memory_space<vmem>>, vector<32x32xf32>
      tpu.vector_store %arg7[%c0_15, %c0_16], %18 {strides = array<i32>} : memref<32x32xf32, #tpu.memory_space<vmem>>, vector<32x32xf32>,
    } else {
    }
    %c0 = arith.constant 0 : index
    %c0_1 = arith.constant 0 : index
    %3 = vector.load %arg2[%c0, %c0_1] : memref<32x1024xf32, #tpu.memory_space<vmem>>, vector<32x1024xf32>
    %c0_2 = arith.constant 0 : index
    %c0_3 = arith.constant 0 : index
    %4 = vector.load %arg3[%c0_2, %c0_3] : memref<1024x32xf32, #tpu.memory_space<vmem>>, vector<1024x32xf32>
    %cst = arith.constant dense<0.000000e+00> : vector<32x32xf32>
    %5 = tpu.matmul %3, %4, %cst {dimension_numbers = #tpu.dot_dimension_numbers<[1], [0], [0], [1], [0, 0, 1, 1], [], []>} : vector<32x1024xf32>, vector<1024x32xf32>, vector<32x32xf32> -> vector<32x32xf32>
    %c0_4 = arith.constant 0 : index
    %c0_5 = arith.constant 0 : index
    %6 = vector.load %arg5[%c0_4, %c0_5] : memref<32x32xf32, #tpu.memory_space<vmem>>, vector<32x32xf32>
    %c0_6 = arith.constant 0 : index
    %c0_7 = arith.constant 0 : index
    %7 = memref.load %arg4[%c0_6, %c0_7] : memref<1x1xf32, #tpu.memory_space<smem>>
    %8 = vector.broadcast %7 : f32 to vector<32x32xf32>
    %9 = arith.addf %5, %8 : vector<32x32xf32>
    %10 = arith.subf %6, %9 : vector<32x32xf32>
    %c0_8 = arith.constant 0 : index
    %c0_9 = arith.constant 0 : index
    %11 = vector.load %arg7[%c0_8, %c0_9] : memref<32x32xf32, #tpu.memory_space<vmem>>, vector<32x32xf32>
    %12 = arith.mulf %10, %10 : vector<32x32xf32>
    %13 = arith.addf %11, %12 : vector<32x32xf32>
    %c0_10 = arith.constant 0 : index
    %c0_11 = arith.constant 0 : index
    %14 = vector.load %arg7[%c0_10, %c0_11] : memref<32x32xf32, #tpu.memory_space<vmem>>, vector<32x32xf32>
    tpu.vector_store %arg7[%c0_10, %c0_11], %13 {strides = array<i32>} : memref<32x32xf32, #tpu.memory_space<vmem>>, vector<32x32xf32>,
    %c0_i32_12 = arith.constant 0 : i32
    %15 = arith.cmpi eq, %arg1, %c0_i32_12 : i32
    %16 = arith.extui %15 : i1 to i32
    %c0_i32_13 = arith.constant 0 : i32
    %17 = arith.cmpi ne, %16, %c0_i32_13 : i32
    scf.if %17 {
      %c0_14 = arith.constant 0 : index
      %c0_15 = arith.constant 0 : index
      %18 = vector.load %arg7[%c0_14, %c0_15] : memref<32x32xf32, #tpu.memory_space<vmem>>, vector<32x32xf32>
      %19 = vector.shape_cast %18 : vector<32x32xf32> to vector<1x32x32xf32>
      %cst_16 = arith.constant dense<0.000000e+00> : vector<1xf32>
      %20 = vector.multi_reduction <add>, %19, %cst_16 [1, 2] : vector<1x32x32xf32> to vector<1xf32>
      %21 = vector.shape_cast %20 : vector<1xf32> to vector<1x1x1xf32>
      %22 = vector.extract %21[0, 0, 0] : f32 from vector<1x1x1xf32>
      %23 = vector.broadcast %22 : f32 to vector<1x8x128xf32>
      %c0_17 = arith.constant 0 : index
      %c0_18 = arith.constant 0 : index
      %c0_19 = arith.constant 0 : index
      %24 = vector.load %arg6[%c0_17, %c0_18, %c0_19] : memref<1x8x128xf32, #tpu.memory_space<vmem>>, vector<1x8x128xf32>
      tpu.vector_store %arg6[%c0_17, %c0_18, %c0_19], %23 {strides = array<i32>} : memref<1x8x128xf32, #tpu.memory_space<vmem>>, vector<1x8x128xf32>,
    } else {
    }
    return
  }
  func.func @transform_0(%arg0: i32, %arg1: i32) -> (i32, i32) {
    %c1_i32 = arith.constant 1 : i32
    %0 = arith.muli %arg0, %c1_i32 : i32
    %1 = arith.addi %0, %arg1 : i32
    %c0_i32 = arith.constant 0 : i32
    %c0_i32_0 = arith.constant 0 : i32
    return %1, %c0_i32 : i32, i32
  }
  func.func @transform_1(%arg0: i32, %arg1: i32) -> (i32, i32) {
    %c0_i32 = arith.constant 0 : i32
    %c0_i32_0 = arith.constant 0 : i32
    %c0_i32_1 = arith.constant 0 : i32
    return %c0_i32, %c0_i32_0 : i32, i32
  }
  func.func @transform_2(%arg0: i32, %arg1: i32) -> (i32, i32) {
    %c0_i32 = arith.constant 0 : i32
    %c0_i32_0 = arith.constant 0 : i32
    %c0_i32_1 = arith.constant 0 : i32
    return %c0_i32, %c0_i32_0 : i32, i32
  }
  func.func @transform_3(%arg0: i32, %arg1: i32) -> (i32, i32) {
    %c1_i32 = arith.constant 1 : i32
    %0 = arith.muli %arg0, %c1_i32 : i32
    %1 = arith.addi %0, %arg1 : i32
    %c0_i32 = arith.constant 0 : i32
    %c0_i32_0 = arith.constant 0 : i32
    return %1, %c0_i32 : i32, i32
  }
  func.func @transform_4(%arg0: i32, %arg1: i32) -> (i32, i32, i32) {
    %c0_i32 = arith.constant 0 : i32
    %c0_i32_0 = arith.constant 0 : i32
    %c0_i32_1 = arith.constant 0 : i32
    return %arg0, %c0_i32, %c0_i32_0 : i32, i32, i32
  }
}

</mosaic_0001>

<bundles_post_ra>
// kernel: tpu_custom_call.1
= control target key start
LH: loop header
LB: loop body
LE: loop exit
PB: predicated region body
PF: predicated region fallthrough
CT: control target
= control target key end

     0   :  { %s1114_s0 = inlined_call_operand.vmem [shape: f32[32,1024], index: 0, kind: input, shape index: {}]   ;;  %s1115_s1 = inlined_call_operand.vmem [shape: f32[1024,32], index: 1, kind: input, shape index: {}]   ;;  %s1116_s2 = inlined_call_operand.<no memory space> [shape: f32[1,1], index: 2, kind: input, shape index: {}]   ;;  %s1117_s3 = inlined_call_operand.vmem [shape: f32[32,32], index: 3, kind: input, shape index: {}]   ;;  %s1118_s4 = inlined_call_operand.hbm [shape: f32[1,8,128], index: 4, kind: output, shape index: {}]  }
   0x1   :  { %v122_v0 = vld [vmem:[%s1115_s1 + $0x78] sm:$0xff]  ;;  %v121_v2 = vld [vmem:[%s1115_s1 + $0x70] sm:$0xff]  ;;  %v120_v6 = vld [vmem:[%s1115_s1 + $0x68] sm:$0xff] }
   0x2   :  { %v154_v1 = vld [vmem:[%s1115_s1 + $0x178] sm:$0xff]  ;;  %241 = vmatpush.msra.mxu0 %v122_v0  ;;  %v153_v4 = vld [vmem:[%s1115_s1 + $0x170] sm:$0xff]  ;;  %v152_v8 = vld [vmem:[%s1115_s1 + $0x168] sm:$0xff] }
   0x3   :  { %299 = vmatpush.msra.mxu2 %v154_v1  ;;  %v138_v3 = vld [vmem:[%s1115_s1 + $0xf8] sm:$0xff]  ;;  %v137_v7 = vld [vmem:[%s1115_s1 + $0xf0] sm:$0xff]  ;;  %v136_v10 = vld [vmem:[%s1115_s1 + $0xe8] sm:$0xff] }
   0x4   :  { %v170_v5 = vld [vmem:[%s1115_s1 + $0x1f8] sm:$0xff]  ;;  %270 = vmatpush.msra.mxu1 %v138_v3  ;;  %242 = vmatpush.msra.mxu0 %v121_v2  ;;  %v169_v9 = vld [vmem:[%s1115_s1 + $0x1f0] sm:$0xff]  ;;  %v119_v11 = vld [vmem:[%s1115_s1 + $0x60] sm:$0xff] }
   0x5   :  { %328 = vmatpush.msra.mxu3 %v170_v5  ;;  %300 = vmatpush.msra.mxu2 %v153_v4  ;;  %v151_v12 = vld [vmem:[%s1115_s1 + $0x160] sm:$0xff]  ;;  %v168_v13 = vld [vmem:[%s1115_s1 + $0x1e8] sm:$0xff]  ;;  %v118_v16 = vld [vmem:[%s1115_s1 + $0x58] sm:$0xff] }
   0x6   :  { %271 = vmatpush.msra.mxu1 %v137_v7  ;;  %243 = vmatpush.msra.mxu0 %v120_v6  ;;  %v135_v14 = vld [vmem:[%s1115_s1 + $0xe0] sm:$0xff]  ;;  %v150_v17 = vld [vmem:[%s1115_s1 + $0x158] sm:$0xff]  ;;  %v117_v20 = vld [vmem:[%s1115_s1 + $0x50] sm:$0xff] }
   0x7   :  { %329 = vmatpush.msra.mxu3 %v169_v9  ;;  %301 = vmatpush.msra.mxu2 %v152_v8  ;;  %v167_v15 = vld [vmem:[%s1115_s1 + $0x1e0] sm:$0xff]  ;;  %v134_v18 = vld [vmem:[%s1115_s1 + $0xd8] sm:$0xff]  ;;  %v149_v21 = vld [vmem:[%s1115_s1 + $0x150] sm:$0xff] }
   0x8   :  { %272 = vmatpush.msra.mxu1 %v136_v10  ;;  %244 = vmatpush.msra.mxu0 %v119_v11  ;;  %v166_v19 = vld [vmem:[%s1115_s1 + $0x1d8] sm:$0xff]  ;;  %v133_v22 = vld [vmem:[%s1115_s1 + $0xd0] sm:$0xff]  ;;  %v116_v24 = vld [vmem:[%s1115_s1 + $0x48] sm:$0xff] }
   0x9   :  { %330 = vmatpush.msra.mxu3 %v168_v13  ;;  %302 = vmatpush.msra.mxu2 %v151_v12  ;;  %v165_v23 = vld [vmem:[%s1115_s1 + $0x1d0] sm:$0xff]  ;;  %v148_v25 = vld [vmem:[%s1115_s1 + $0x148] sm:$0xff]  ;;  %v115_v28 = vld [vmem:[%s1115_s1 + $0x40] sm:$0xff] }
   0xa   :  { %273 = vmatpush.msra.mxu1 %v135_v14  ;;  %245 = vmatpush.msra.mxu0 %v118_v16  ;;  %v132_v26 = vld [vmem:[%s1115_s1 + $0xc8] sm:$0xff]  ;;  %v147_v29 = vld [vmem:[%s1115_s1 + $0x140] sm:$0xff]  ;;  %v114_v32 = vld [vmem:[%s1115_s1 + $0x38] sm:$0xff] }
   0xb   :  { %331 = vmatpush.msra.mxu3 %v167_v15  ;;  %303 = vmatpush.msra.mxu2 %v150_v17  ;;  %v164_v27 = vld [vmem:[%s1115_s1 + $0x1c8] sm:$0xff]  ;;  %v131_v30 = vld [vmem:[%s1115_s1 + $0xc0] sm:$0xff]  ;;  %v146_v33 = vld [vmem:[%s1115_s1 + $0x138] sm:$0xff] }
   0xc   :  { %274 = vmatpush.msra.mxu1 %v134_v18  ;;  %246 = vmatpush.msra.mxu0 %v117_v20  ;;  %v163_v31 = vld [vmem:[%s1115_s1 + $0x1c0] sm:$0xff]  ;;  %v130_v34 = vld [vmem:[%s1115_s1 + $0xb8] sm:$0xff]  ;;  %v113_v36 = vld [vmem:[%s1115_s1 + $0x30] sm:$0xff] }
   0xd   :  { %332 = vmatpush.msra.mxu3 %v166_v19  ;;  %304 = vmatpush.msra.mxu2 %v149_v21  ;;  %v162_v35 = vld [vmem:[%s1115_s1 + $0x1b8] sm:$0xff]  ;;  %v145_v37 = vld [vmem:[%s1115_s1 + $0x130] sm:$0xff]  ;;  %v112_v40 = vld [vmem:[%s1115_s1 + $0x28] sm:$0xff] }
   0xe   :  { %275 = vmatpush.msra.mxu1 %v133_v22  ;;  %247 = vmatpush.msra.mxu0 %v116_v24  ;;  %v129_v38 = vld [vmem:[%s1115_s1 + $0xb0] sm:$0xff]  ;;  %v144_v41 = vld [vmem:[%s1115_s1 + $0x128] sm:$0xff]  ;;  %v111_v44 = vld [vmem:[%s1115_s1 + $0x20] sm:$0xff] }
   0xf   :  { %333 = vmatpush.msra.mxu3 %v165_v23  ;;  %305 = vmatpush.msra.mxu2 %v148_v25  ;;  %v161_v39 = vld [vmem:[%s1115_s1 + $0x1b0] sm:$0xff]  ;;  %v128_v42 = vld [vmem:[%s1115_s1 + $0xa8] sm:$0xff]  ;;  %v143_v45 = vld [vmem:[%s1115_s1 + $0x120] sm:$0xff] }
  0x10   :  { %276 = vmatpush.msra.mxu1 %v132_v26  ;;  %248 = vmatpush.msra.mxu0 %v115_v28  ;;  %v160_v43 = vld [vmem:[%s1115_s1 + $0x1a8] sm:$0xff]  ;;  %v127_v46 = vld [vmem:[%s1115_s1 + $0xa0] sm:$0xff]  ;;  %v110_v48 = vld [vmem:[%s1115_s1 + $0x18] sm:$0xff] }
  0x11   :  { %334 = vmatpush.msra.mxu3 %v164_v27  ;;  %306 = vmatpush.msra.mxu2 %v147_v29  ;;  %v159_v47 = vld [vmem:[%s1115_s1 + $0x1a0] sm:$0xff]  ;;  %v142_v49 = vld [vmem:[%s1115_s1 + $0x118] sm:$0xff]  ;;  %v109_v52 = vld [vmem:[%s1115_s1 + $0x10] sm:$0xff] }
  0x12   :  { %277 = vmatpush.msra.mxu1 %v131_v30  ;;  %249 = vmatpush.msra.mxu0 %v114_v32  ;;  %v126_v50 = vld [vmem:[%s1115_s1 + $0x98] sm:$0xff]  ;;  %v141_v53 = vld [vmem:[%s1115_s1 + $0x110] sm:$0xff]  ;;  %v108_v56 = vld [vmem:[%s1115_s1 + $0x8] sm:$0xff] }
  0x13   :  { %335 = vmatpush.msra.mxu3 %v163_v31  ;;  %307 = vmatpush.msra.mxu2 %v146_v33  ;;  %v158_v51 = vld [vmem:[%s1115_s1 + $0x198] sm:$0xff]  ;;  %v125_v54 = vld [vmem:[%s1115_s1 + $0x90] sm:$0xff]  ;;  %v140_v57 = vld [vmem:[%s1115_s1 + $0x108] sm:$0xff] }
  0x14   :  { %278 = vmatpush.msra.mxu1 %v130_v34  ;;  %250 = vmatpush.msra.mxu0 %v113_v36  ;;  %v157_v55 = vld [vmem:[%s1115_s1 + $0x190] sm:$0xff]  ;;  %v124_v58 = vld [vmem:[%s1115_s1 + $0x88] sm:$0xff]  ;;  %v107_v60 = vld [vmem:[%s1115_s1] sm:$0xff] }
  0x15   :  { %336 = vmatpush.msra.mxu3 %v162_v35  ;;  %308 = vmatpush.msra.mxu2 %v145_v37  ;;  %v156_v59 = vld [vmem:[%s1115_s1 + $0x188] sm:$0xff]  ;;  %v139_v61 = vld [vmem:[%s1115_s1 + $0x100] sm:$0xff]  ;;  %v77_v63 = vld [vmem:[%s1114_s0 + $0x10] sm:$0xff] }
  0x16   :  { %279 = vmatpush.msra.mxu1 %v129_v38  ;;  %251 = vmatpush.msra.mxu0 %v112_v40  ;;  %v75_v62 = vld [vmem:[%s1114_s0] sm:$0xff]  ;;  %v218_v0 = vld [vmem:[%s1115_s1 + $0x378] sm:$0xff]  ;;  %v76_v4 = vld [vmem:[%s1114_s0 + $0x8] sm:$0xff] }
  0x17   :  { %337 = vmatpush.msra.mxu3 %v161_v39  ;;  %309 = vmatpush.msra.mxu2 %v144_v41  ;;  %v123_v1 = vld [vmem:[%s1115_s1 + $0x80] sm:$0xff]  ;;  %v186_v3 = vld [vmem:[%s1115_s1 + $0x278] sm:$0xff]  ;;  %v217_v6 = vld [vmem:[%s1115_s1 + $0x370] sm:$0xff] }
  0x18   :  { %280 = vmatpush.msra.mxu1 %v128_v42  ;;  %252 = vmatpush.msra.mxu0 %v111_v44  ;;  %v155_v2 = vld [vmem:[%s1115_s1 + $0x180] sm:$0xff]  ;;  %v78_v5 = vld [vmem:[%s1114_s0 + $0x18] sm:$0xff]  ;;  %v185_v8 = vld [vmem:[%s1115_s1 + $0x270] sm:$0xff] }
  0x19   :  { %338 = vmatpush.msra.mxu3 %v160_v43  ;;  %310 = vmatpush.msra.mxu2 %v143_v45  ;;  %v234_v7 = vld [vmem:[%s1115_s1 + $0x3f8] sm:$0xff]  ;;  %v216_v10 = vld [vmem:[%s1115_s1 + $0x368] sm:$0xff]  ;;  %v233_v11 = vld [vmem:[%s1115_s1 + $0x3f0] sm:$0xff] }
  0x1a   :  { %281 = vmatpush.msra.mxu1 %v127_v46  ;;  %253 = vmatpush.msra.mxu0 %v110_v48  ;;  %v202_v9 = vld [vmem:[%s1115_s1 + $0x2f8] sm:$0xff]  ;;  %v184_v12 = vld [vmem:[%s1115_s1 + $0x268] sm:$0xff]  ;;  %v201_v13 = vld [vmem:[%s1115_s1 + $0x2f0] sm:$0xff] }
  0x1b   :  { %339 = vmatpush.msra.mxu3 %v159_v47  ;;  %311 = vmatpush.msra.mxu2 %v142_v49  ;;  %v215_v14 = vld [vmem:[%s1115_s1 + $0x360] sm:$0xff]  ;;  %v232_v15 = vld [vmem:[%s1115_s1 + $0x3e8] sm:$0xff]  ;;  %v85_v19 = vld [vmem:[%s1114_s0 + $0x50] sm:$0xff] }
  0x1c   :  { %282 = vmatpush.msra.mxu1 %v126_v50  ;;  %254 = vmatpush.msra.mxu0 %v109_v52  ;;  %v183_v16 = vld [vmem:[%s1115_s1 + $0x260] sm:$0xff]  ;;  %v200_v17 = vld [vmem:[%s1115_s1 + $0x2e8] sm:$0xff]  ;;  %v214_v20 = vld [vmem:[%s1115_s1 + $0x358] sm:$0xff] }
  0x1d   :  { %340 = vmatpush.msra.mxu3 %v158_v51  ;;  %312 = vmatpush.msra.mxu2 %v141_v53  ;;  %v83_v18 = vld [vmem:[%s1114_s0 + $0x40] sm:$0xff]  ;;  %v182_v22 = vld [vmem:[%s1115_s1 + $0x258] sm:$0xff]  ;;  %v84_v24 = vld [vmem:[%s1114_s0 + $0x48] sm:$0xff] }
  0x1e   :  { %283 = vmatpush.msra.mxu1 %v125_v54  ;;  %255 = vmatpush.msra.mxu0 %v108_v56  ;;  %v231_v21 = vld [vmem:[%s1115_s1 + $0x3e0] sm:$0xff]  ;;  %v86_v25 = vld [vmem:[%s1114_s0 + $0x58] sm:$0xff]  ;;  %v213_v26 = vld [vmem:[%s1115_s1 + $0x350] sm:$0xff] }
  0x1f   :  { %341 = vmatpush.msra.mxu3 %v157_v55  ;;  %313 = vmatpush.msra.mxu2 %v140_v57  ;;  %v199_v23 = vld [vmem:[%s1115_s1 + $0x2e0] sm:$0xff]  ;;  %v230_v27 = vld [vmem:[%s1115_s1 + $0x3d8] sm:$0xff]  ;;  %v181_v28 = vld [vmem:[%s1115_s1 + $0x250] sm:$0xff] }
  0x20   :  { %284 = vmatpush.msra.mxu1 %v124_v58  ;;  %256 = vmatpush.msra.mxu0 %v107_v60  ;;  %v198_v29 = vld [vmem:[%s1115_s1 + $0x2d8] sm:$0xff]  ;;  %v212_v30 = vld [vmem:[%s1115_s1 + $0x348] sm:$0xff]  ;;  %v229_v31 = vld [vmem:[%s1115_s1 + $0x3d0] sm:$0xff] }
  0x21   :  { %342 = vmatpush.msra.mxu3 %v156_v59  ;;  %314 = vmatpush.msra.mxu2 %v139_v61  ;;  %v180_v32 = vld [vmem:[%s1115_s1 + $0x248] sm:$0xff]  ;;  %v197_v33 = vld [vmem:[%s1115_s1 + $0x2d0] sm:$0xff]  ;;  %v211_v34 = vld [vmem:[%s1115_s1 + $0x340] sm:$0xff] }
  0x22   :  { %257 = vmatmul.f32.vlgmr.msra.gmra.mxu0 %v75_v62  ;;  %315 = vmatmul.f32.vlgmr.msra.gmra.mxu2 %v77_v63  ;;  %v228_v35 = vld [vmem:[%s1115_s1 + $0x3c8] sm:$0xff]  ;;  %v179_v36 = vld [vmem:[%s1115_s1 + $0x240] sm:$0xff]  ;;  %v93_v39 = vld [vmem:[%s1114_s0 + $0x90] sm:$0xff] }
  0x23   :  { %415 = vmatpush.msrb.mxu2 %v218_v0  ;;  %285 = vmatpush.msra.mxu1 %v123_v1  ;;  %v196_v37 = vld [vmem:[%s1115_s1 + $0x2c8] sm:$0xff]  ;;  %v91_v38 = vld [vmem:[%s1114_s0 + $0x80] sm:$0xff]  ;;  %v210_v40 = vld [vmem:[%s1115_s1 + $0x338] sm:$0xff] }
  0x24   :  { %343 = vmatpush.msra.mxu3 %v155_v2  ;;  %357 = vmatpush.msrb.mxu0 %v186_v3  ;;  %v227_v41 = vld [vmem:[%s1115_s1 + $0x3c0] sm:$0xff]  ;;  %v178_v42 = vld [vmem:[%s1115_s1 + $0x238] sm:$0xff] }
  0x25   :  { %286 = vmatmul.f32.vlgmr.msra.gmra.mxu1 %v76_v4  ;;  %344 = vmatmul.f32.vlgmr.msra.gmra.mxu3 %v78_v5  ;;  %v195_v43 = vld [vmem:[%s1115_s1 + $0x2c0] sm:$0xff] }
  0x26   :  { %416 = vmatpush.msrb.mxu2 %v217_v6  ;;  %444 = vmatpush.msrb.mxu3 %v234_v7 }
  0x27   :  { %358 = vmatpush.msrb.mxu0 %v185_v8  ;;  %386 = vmatpush.msrb.mxu1 %v202_v9 }
  0x28   :  { %417 = vmatpush.msrb.mxu2 %v216_v10  ;;  %445 = vmatpush.msrb.mxu3 %v233_v11 }
  0x29   :  { %359 = vmatpush.msrb.mxu0 %v184_v12  ;;  %387 = vmatpush.msrb.mxu1 %v201_v13 }
  0x2a   :  { %418 = vmatpush.msrb.mxu2 %v215_v14  ;;  %446 = vmatpush.msrb.mxu3 %v232_v15 }
  0x2b   :  { %360 = vmatpush.msrb.mxu0 %v183_v16  ;;  %388 = vmatpush.msrb.mxu1 %v200_v17 }
  0x2c   :  { %260 = vmatmul.f32.gmra.mxu0 %v83_v18  ;;  %318 = vmatmul.f32.gmra.mxu2 %v85_v19 }
  0x2d   :  { %419 = vmatpush.msrb.mxu2 %v214_v20  ;;  %447 = vmatpush.msrb.mxu3 %v231_v21 }
  0x2e   :  { %361 = vmatpush.msrb.mxu0 %v182_v22  ;;  %389 = vmatpush.msrb.mxu1 %v199_v23 }
  0x2f   :  { %289 = vmatmul.f32.gmra.mxu1 %v84_v24  ;;  %347 = vmatmul.f32.gmra.mxu3 %v86_v25 }
  0x30   :  { %420 = vmatpush.msrb.mxu2 %v213_v26  ;;  %448 = vmatpush.msrb.mxu3 %v230_v27 }
  0x31   :  { %362 = vmatpush.msrb.mxu0 %v181_v28  ;;  %390 = vmatpush.msrb.mxu1 %v198_v29 }
  0x32   :  { %421 = vmatpush.msrb.mxu2 %v212_v30  ;;  %449 = vmatpush.msrb.mxu3 %v229_v31 }
  0x33   :  { %363 = vmatpush.msrb.mxu0 %v180_v32  ;;  %391 = vmatpush.msrb.mxu1 %v197_v33 }
  0x34   :  { %422 = vmatpush.msrb.mxu2 %v211_v34  ;;  %450 = vmatpush.msrb.mxu3 %v228_v35 }
  0x35   :  { %364 = vmatpush.msrb.mxu0 %v179_v36  ;;  %392 = vmatpush.msrb.mxu1 %v196_v37 }
  0x36   :  { %10 = vsyncpa [#allocation5], 0  ;;  %263 = vmatmul.f32.gmra.mxu0 %v91_v38  ;;  %321 = vmatmul.f32.gmra.mxu2 %v93_v39  ;;  %v92_v44 = vld [vmem:[%s1114_s0 + $0x88] sm:$0xff]  ;;  %v94_v45 = vld [vmem:[%s1114_s0 + $0x98] sm:$0xff]  ;;  %vm70_vm0 = vcmask 261120   ;;  %v577_v38 = vmov 0.0  }
  0x37   :  { %423 = vmatpush.msrb.mxu2 %v210_v40  ;;  %451 = vmatpush.msrb.mxu3 %v227_v41  ;;  %v209_v46 = vld [vmem:[%s1115_s1 + $0x330] sm:$0xff]  ;;  %v226_v47 = vld [vmem:[%s1115_s1 + $0x3b8] sm:$0xff]  ;;  %v208_v50 = vld [vmem:[%s1115_s1 + $0x328] sm:$0xff]  ;;  %71 = vst.msk [vmem:[#allocation2] sm:$0xff] %vm70_vm0, %v577_v38  ;;  %s526_s6 = sshll.u32 %s1118_s4, 4  ;;  %s527_s6 = int_to_ptr.hbm [resolvable:$true] %s526_s6 }
  0x38   :  { %365 = vmatpush.msrb.mxu0 %v178_v42  ;;  %393 = vmatpush.msrb.mxu1 %v195_v43  ;;  %v177_v48 = vld [vmem:[%s1115_s1 + $0x230] sm:$0xff]  ;;  %v194_v49 = vld [vmem:[%s1115_s1 + $0x2b8] sm:$0xff]  ;;  %v176_v52 = vld [vmem:[%s1115_s1 + $0x228] sm:$0xff]  ;;  %72 = vst.msk [vmem:[#allocation2 + $0x8] sm:$0xff] %vm70_vm0, %v577_v38  ;;  %v240_v43 = vstv %s1116_s2 }
  0x39   :  { %292 = vmatmul.f32.gmra.mxu1 %v92_v44  ;;  %350 = vmatmul.f32.gmra.mxu3 %v94_v45  ;;  %v225_v51 = vld [vmem:[%s1115_s1 + $0x3b0] sm:$0xff]  ;;  %v207_v54 = vld [vmem:[%s1115_s1 + $0x320] sm:$0xff]  ;;  %v224_v55 = vld [vmem:[%s1115_s1 + $0x3a8] sm:$0xff]  ;;  %73 = vst.msk [vmem:[#allocation2 + $0x10] sm:$0xff] %vm70_vm0, %v577_v38 }
  0x3a   :  { %424 = vmatpush.msrb.mxu2 %v209_v46  ;;  %452 = vmatpush.msrb.mxu3 %v226_v47  ;;  %v193_v53 = vld [vmem:[%s1115_s1 + $0x2b0] sm:$0xff]  ;;  %v175_v56 = vld [vmem:[%s1115_s1 + $0x220] sm:$0xff]  ;;  %v192_v57 = vld [vmem:[%s1115_s1 + $0x2a8] sm:$0xff]  ;;  %74 = vst.msk [vmem:[#allocation2 + $0x18] sm:$0xff] %vm70_vm0, %v577_v38 }
  0x3b   :  { %366 = vmatpush.msrb.mxu0 %v177_v48  ;;  %394 = vmatpush.msrb.mxu1 %v194_v49  ;;  %v99_v58 = vld [vmem:[%s1114_s0 + $0xc0] sm:$0xff]  ;;  %v101_v59 = vld [vmem:[%s1114_s0 + $0xd0] sm:$0xff]  ;;  %v206_v60 = vld [vmem:[%s1115_s1 + $0x318] sm:$0xff] }
  0x3c   :  { %425 = vmatpush.msrb.mxu2 %v208_v50  ;;  %453 = vmatpush.msrb.mxu3 %v225_v51  ;;  %v223_v61 = vld [vmem:[%s1115_s1 + $0x3a0] sm:$0xff]  ;;  %v174_v62 = vld [vmem:[%s1115_s1 + $0x218] sm:$0xff]  ;;  %v100_v0 = vld [vmem:[%s1114_s0 + $0xc8] sm:$0xff] }
  0x3d   :  { %367 = vmatpush.msrb.mxu0 %v176_v52  ;;  %395 = vmatpush.msrb.mxu1 %v193_v53  ;;  %v191_v63 = vld [vmem:[%s1115_s1 + $0x2a0] sm:$0xff]  ;;  %v102_v1 = vld [vmem:[%s1114_s0 + $0xd8] sm:$0xff]  ;;  %v205_v2 = vld [vmem:[%s1115_s1 + $0x310] sm:$0xff] }
  0x3e   :  { %426 = vmatpush.msrb.mxu2 %v207_v54  ;;  %454 = vmatpush.msrb.mxu3 %v224_v55  ;;  %v222_v3 = vld [vmem:[%s1115_s1 + $0x398] sm:$0xff]  ;;  %v173_v4 = vld [vmem:[%s1115_s1 + $0x210] sm:$0xff]  ;;  %v204_v6 = vld [vmem:[%s1115_s1 + $0x308] sm:$0xff] }
  0x3f   :  { %368 = vmatpush.msrb.mxu0 %v175_v56  ;;  %396 = vmatpush.msrb.mxu1 %v192_v57  ;;  %v190_v5 = vld [vmem:[%s1115_s1 + $0x298] sm:$0xff]  ;;  %v221_v7 = vld [vmem:[%s1115_s1 + $0x390] sm:$0xff]  ;;  %v172_v8 = vld [vmem:[%s1115_s1 + $0x208] sm:$0xff] }
  0x40   :  { %266 = vmatmul.f32.gmra.mxu0 %v99_v58  ;;  %324 = vmatmul.f32.gmra.mxu2 %v101_v59  ;;  %v189_v9 = vld [vmem:[%s1115_s1 + $0x290] sm:$0xff]  ;;  %v203_v10 = vld [vmem:[%s1115_s1 + $0x300] sm:$0xff]  ;;  %v220_v11 = vld [vmem:[%s1115_s1 + $0x388] sm:$0xff] }
  0x41   :  { %427 = vmatpush.msrb.mxu2 %v206_v60  ;;  %455 = vmatpush.msrb.mxu3 %v223_v61  ;;  %v171_v12 = vld [vmem:[%s1115_s1 + $0x200] sm:$0xff]  ;;  %v188_v13 = vld [vmem:[%s1115_s1 + $0x288] sm:$0xff]  ;;  %v81_v15 = vld [vmem:[%s1114_s0 + $0x30] sm:$0xff] }
  0x42   :  { %369 = vmatpush.msrb.mxu0 %v174_v62  ;;  %397 = vmatpush.msrb.mxu1 %v191_v63  ;;  %v79_v14 = vld [vmem:[%s1114_s0 + $0x20] sm:$0xff]  ;;  %v80_v18 = vld [vmem:[%s1114_s0 + $0x28] sm:$0xff]  ;;  %v82_v19 = vld [vmem:[%s1114_s0 + $0x38] sm:$0xff] }
  0x43   :  { %295 = vmatmul.f32.gmra.mxu1 %v100_v0  ;;  %353 = vmatmul.f32.gmra.mxu3 %v102_v1  ;;  %v219_v16 = vld [vmem:[%s1115_s1 + $0x380] sm:$0xff]  ;;  %v89_v21 = vld [vmem:[%s1114_s0 + $0x70] sm:$0xff]  ;;  %v88_v22 = vld [vmem:[%s1114_s0 + $0x68] sm:$0xff] }
  0x44   :  { %428 = vmatpush.msrb.mxu2 %v205_v2  ;;  %456 = vmatpush.msrb.mxu3 %v222_v3  ;;  %v187_v17 = vld [vmem:[%s1115_s1 + $0x280] sm:$0xff]  ;;  %v90_v23 = vld [vmem:[%s1114_s0 + $0x78] sm:$0xff]  ;;  %v97_v25 = vld [vmem:[%s1114_s0 + $0xb0] sm:$0xff] }
  0x45   :  { %370 = vmatpush.msrb.mxu0 %v173_v4  ;;  %398 = vmatpush.msrb.mxu1 %v190_v5  ;;  %v87_v20 = vld [vmem:[%s1114_s0 + $0x60] sm:$0xff]  ;;  %v96_v26 = vld [vmem:[%s1114_s0 + $0xa8] sm:$0xff]  ;;  %v98_v27 = vld [vmem:[%s1114_s0 + $0xb8] sm:$0xff] }
  0x46   :  { %429 = vmatpush.msrb.mxu2 %v204_v6  ;;  %457 = vmatpush.msrb.mxu3 %v221_v7  ;;  %v95_v24 = vld [vmem:[%s1114_s0 + $0xa0] sm:$0xff]  ;;  %v105_v29 = vld [vmem:[%s1114_s0 + $0xf0] sm:$0xff]  ;;  %v104_v30 = vld [vmem:[%s1114_s0 + $0xe8] sm:$0xff] }
  0x47   :  { %371 = vmatpush.msrb.mxu0 %v172_v8  ;;  %399 = vmatpush.msrb.mxu1 %v189_v9  ;;  %v103_v28 = vld [vmem:[%s1114_s0 + $0xe0] sm:$0xff]  ;;  %v106_v31 = vld [vmem:[%s1114_s0 + $0xf8] sm:$0xff] }
  0x48   :  { %430 = vmatpush.msrb.mxu2 %v203_v10  ;;  %458 = vmatpush.msrb.mxu3 %v220_v11  ;;  %v235_v3 = vld [vmem:[%s1117_s3] sm:$0xff] }
  0x49   :  { %372 = vmatpush.msrb.mxu0 %v171_v12  ;;  %400 = vmatpush.msrb.mxu1 %v188_v13  ;;  %v477_v11 = vld [vmem:[#allocation2] sm:$0xff] }
  0x4a   :  { %373 = vmatmul.f32.vlgmr.msrb.gmra.mxu0 %v79_v14  ;;  %431 = vmatmul.f32.vlgmr.msrb.gmra.mxu2 %v81_v15 }
  0x4b   :  { %459 = vmatpush.msrb.mxu3 %v219_v16  ;;  %401 = vmatpush.msrb.mxu1 %v187_v17 }
  0x4c   :  { %402 = vmatmul.f32.vlgmr.msrb.gmra.mxu1 %v80_v18  ;;  %460 = vmatmul.f32.vlgmr.msrb.gmra.mxu3 %v82_v19 }
  0x52   :  { %376 = vmatmul.f32.gmra.mxu0 %v87_v20  ;;  %434 = vmatmul.f32.gmra.mxu2 %v89_v21  ;;  %v236_v20 = vld [vmem:[%s1117_s3 + $0x8] sm:$0xff] }
  0x54   :  { %405 = vmatmul.f32.gmra.mxu1 %v88_v22  ;;  %463 = vmatmul.f32.gmra.mxu3 %v90_v23 }
  0x5a   :  { %379 = vmatmul.f32.gmra.mxu0 %v95_v24  ;;  %437 = vmatmul.f32.gmra.mxu2 %v97_v25 }
  0x5c   :  { %408 = vmatmul.f32.gmra.mxu1 %v96_v26  ;;  %466 = vmatmul.f32.gmra.mxu3 %v98_v27  ;;  %v478_v27 = vld [vmem:[#allocation2 + $0x8] sm:$0xff] }
  0x62   :  { %382 = vmatmul.f32.gmra.mxu0 %v103_v28  ;;  %440 = vmatmul.f32.gmra.mxu2 %v105_v29 }
  0x64   :  { %411 = vmatmul.f32.gmra.mxu1 %v104_v30  ;;  %469 = vmatmul.f32.gmra.mxu3 %v106_v31 }
  0x9f   :  { %v258_v32 = vpop.f32.mrf.mxu0 }
  0xa0   :  { %v259_v45 = vadd.f32 %v258_v32, %v240_v43 }
  0xa2   :  { %v287_v33 = vpop.f32.mrf.mxu1 }
  0xa3   :  { %v288_v48 = vadd.f32 %v287_v33, %v259_v45 }
  0xa5   :  { %v316_v34 = vpop.f32.mrf.mxu2 }
  0xa6   :  { %v317_v50 = vadd.f32 %v316_v34, %v288_v48 }
  0xa8   :  { %v345_v35 = vpop.f32.mrf.mxu3 }
  0xa9   :  { %v261_v36 = vpop.f32.mrf.mxu0  ;;  %v346_v53 = vadd.f32 %v345_v35, %v317_v50  ;;  %v237_v35 = vld [vmem:[%s1117_s3 + $0x10] sm:$0xff] }
  0xaa   :  { %v262_v51 = vadd.f32 %v261_v36, %v240_v43 }
  0xac   :  { %v290_v37 = vpop.f32.mrf.mxu1 }
  0xad   :  { %v291_v54 = vadd.f32 %v290_v37, %v262_v51  ;;  %v480_v51 = vld [vmem:[#allocation2 + $0x18] sm:$0xff] }
  0xaf   :  { %v319_v39 = vpop.f32.mrf.mxu2 }
  0xb0   :  { %v320_v59 = vadd.f32 %v319_v39, %v291_v54 }
  0xb2   :  { %v348_v40 = vpop.f32.mrf.mxu3 }
  0xb3   :  { %v264_v41 = vpop.f32.mrf.mxu0  ;;  %v349_v63 = vadd.f32 %v348_v40, %v320_v59 }
  0xb4   :  { %v265_v60 = vadd.f32 %v264_v41, %v240_v43  ;;  %v479_v41 = vld [vmem:[#allocation2 + $0x10] sm:$0xff] }
  0xb6   :  { %v293_v42 = vpop.f32.mrf.mxu1 }
  0xb7   :  { %v294_v0 = vadd.f32 %v293_v42, %v265_v60 }
  0xb9   :  { %v322_v44 = vpop.f32.mrf.mxu2 }
  0xba   :  { %v323_v8 = vadd.f32 %v322_v44, %v294_v0 }
  0xbc   :  { %v351_v46 = vpop.f32.mrf.mxu3 }
  0xbd   :  { %v267_v47 = vpop.f32.mrf.mxu0  ;;  %v352_v15 = vadd.f32 %v351_v46, %v323_v8 }
  0xbe   :  { %v268_v9 = vadd.f32 %v267_v47, %v240_v43  ;;  %v238_v47 = vld [vmem:[%s1117_s3 + $0x18] sm:$0xff]  ;;  %s578_s3 = smov [#allocation4]  }
  0xbf   :  { %s524_s29 = sshll.u32 %s578_s3, 4  ;;  %s525_s29 = int_to_ptr.vmem [resolvable:$true] %s524_s29 }
  0xc0   :  { %v296_v49 = vpop.f32.mrf.mxu1 }
  0xc1   :  { %v297_v16 = vadd.f32 %v296_v49, %v268_v9 }
  0xc3   :  { %v325_v52 = vpop.f32.mrf.mxu2 }
  0xc4   :  { %v326_v25 = vadd.f32 %v325_v52, %v297_v16 }
  0xc6   :  { %v354_v55 = vpop.f32.mrf.mxu3 }
  0xc7   :  { %v374_v56 = vpop.f32.mrf.mxu0  ;;  %v355_v31 = vadd.f32 %v354_v55, %v326_v25 }
  0xc8   :  { %v375_v57 = vadd.f32 %v374_v56, %v346_v53 }
  0xc9   :  { %v403_v58 = vpop.f32.mrf.mxu1 }
  0xca   :  { %v404_v61 = vadd.f32 %v403_v58, %v375_v57 }
  0xcd   :  { %v432_v62 = vpop.f32.mrf.mxu2 }
  0xce   :  { %v433_v1 = vadd.f32 %v432_v62, %v404_v61 }
  0xcf   :  { %v377_v2 = vpop.f32.mrf.mxu0  ;;  %v461_v4 = vpop.f32.mrf.mxu3 }
  0xd0   :  { %v378_v5 = vadd.f32 %v377_v2, %v349_v63  ;;  %v462_v6 = vadd.f32 %v461_v4, %v433_v1 }
  0xd1   :  { %v406_v7 = vpop.f32.mrf.mxu1 }
  0xd2   :  { %v473_v10 = vsub.f32 %v235_v3, %v462_v6  ;;  %v407_v13 = vadd.f32 %v406_v7, %v378_v5 }
  0xd4   :  { %v481_v12 = vmul.f32 %v473_v10, %v473_v10 }
  0xd5   :  { %v435_v14 = vpop.f32.mrf.mxu2 }
  0xd6   :  { %v485_v17 = vadd.f32 %v481_v12, %v477_v11  ;;  %v436_v18 = vadd.f32 %v435_v14, %v407_v13 }
  0xd7   :  { %v380_v19 = vpop.f32.mrf.mxu0  ;;  %v464_v21 = vpop.f32.mrf.mxu3 }
  0xd8   :  { %490 = vst.msk [vmem:[#allocation2] sm:$0xff] %vm70_vm0, %v485_v17  ;;  %v381_v22 = vadd.f32 %v380_v19, %v352_v15  ;;  %v465_v23 = vadd.f32 %v464_v21, %v436_v18 }
  0xd9   :  { %v409_v24 = vpop.f32.mrf.mxu1 }
  0xda   :  { %v474_v26 = vsub.f32 %v236_v20, %v465_v23  ;;  %v410_v29 = vadd.f32 %v409_v24, %v381_v22 }
  0xdc   :  { %v482_v28 = vmul.f32 %v474_v26, %v474_v26 }
  0xdd   :  { %v438_v30 = vpop.f32.mrf.mxu2 }
  0xde   :  { %v486_v32 = vadd.f32 %v482_v28, %v478_v27  ;;  %v439_v33 = vadd.f32 %v438_v30, %v410_v29 }
  0xdf   :  { %v383_v34 = vpop.f32.mrf.mxu0  ;;  %v467_v36 = vpop.f32.mrf.mxu3  ;;  %v497_v55 = vld [vmem:[#allocation2] sm:$0xff] }
  0xe0   :  { %491 = vst.msk [vmem:[#allocation2 + $0x8] sm:$0xff] %vm70_vm0, %v486_v32  ;;  %v384_v37 = vadd.f32 %v383_v34, %v355_v31  ;;  %v468_v38 = vadd.f32 %v467_v36, %v439_v33  ;;  %v501_v58 = vsel %vm70_vm0, %v497_v55, 0.0 }
  0xe1   :  { %v412_v39 = vpop.f32.mrf.mxu1 }
  0xe2   :  { %v475_v40 = vsub.f32 %v237_v35, %v468_v38  ;;  %v413_v43 = vadd.f32 %v412_v39, %v384_v37 }
  0xe4   :  { %v483_v42 = vmul.f32 %v475_v40, %v475_v40 }
  0xe5   :  { %v441_v44 = vpop.f32.mrf.mxu2 }
  0xe6   :  { %v487_v45 = vadd.f32 %v483_v42, %v479_v41  ;;  %v442_v46 = vadd.f32 %v441_v44, %v413_v43 }
  0xe7   :  { %v470_v48 = vpop.f32.mrf.mxu3  ;;  %v498_v54 = vld [vmem:[#allocation2 + $0x8] sm:$0xff] }
  0xe8   :  { %492 = vst.msk [vmem:[#allocation2 + $0x10] sm:$0xff] %vm70_vm0, %v487_v45  ;;  %v471_v49 = vadd.f32 %v470_v48, %v442_v46  ;;  %v502_v57 = vsel %vm70_vm0, %v498_v54, 0.0 }
  0xe9   :  { %v503_v60 = vadd.f32 %v502_v57, %v501_v58 }
  0xea   :  { %v476_v50 = vsub.f32 %v238_v47, %v471_v49 }
  0xec   :  { %v484_v52 = vmul.f32 %v476_v50, %v476_v50 }
  0xee   :  { %v488_v53 = vadd.f32 %v484_v52, %v480_v51 }
  0xef   :  { %v499_v56 = vld [vmem:[#allocation2 + $0x10] sm:$0xff] }
  0xf0   :  { %493 = vst.msk [vmem:[#allocation2 + $0x18] sm:$0xff] %vm70_vm0, %v488_v53  ;;  %v504_v59 = vsel %vm70_vm0, %v499_v56, 0.0 }
  0xf1   :  { %v505_v62 = vadd.f32 %v504_v59, %v503_v60 }
  0xf7   :  { %v500_v61 = vld [vmem:[#allocation2 + $0x18] sm:$0xff] }
  0xf8   :  { %v506_v63 = vsel %vm70_vm0, %v500_v61, 0.0 }
  0xf9   :  { %v507_v0 = vadd.f32 %v506_v63, %v505_v62 }
  0xfb   :  { %508 = vadd.xlane.f32.xlu0 %v507_v0 }
 0x16e   :  { %v509_v1 = vpop.xlane.xlu0 %508 }
 0x16f   :  { %v510_v2 = vrot.slane %v509_v1, 4 }
 0x171   :  { %v511_v3 = vadd.f32 %v510_v2, %v509_v1 }
 0x173   :  { %v512_v4 = vrot.slane %v511_v3, 2 }
 0x175   :  { %v513_v5 = vadd.f32 %v512_v4, %v511_v3 }
 0x177   :  { %v514_v6 = vrot.slane %v513_v5, 1 }
 0x179   :  { %v515_v7 = vadd.f32 %v514_v6, %v513_v5 }
 0x17b   :  { %547 = vpush %v515_v7 }
 0x1ac   :  { %s548_s7 = spop %547 }
 0x1ad   :  { %v517_v8 = vstv %s548_s7 }
 0x1ae   :  { %518 = vst [vmem:[#allocation4] sm:$0xff] %v517_v8 }
 0x1af   :  { %529 = dma.vmem_to_hbm [thread:$0]  %s525_s29, 128, %s527_s6, [#allocation5]  }
 0x1b0   :  { %575 = dma.done.wait [#allocation5], 128  }
 0x1b1   :  { %576 = vsyncadd [#allocation5], 4294967168 }
 0x1b2   :  { %534 = vsyncpa [#allocation5], 1 }

</bundles_post_ra>
